<compile_context>
chip_gen: v6e
topology: v6e:2x2x1
jax: 0.10.0
libtpu: 0.0.40
codegen_flags: <defaults>
</compile_context>

<pallas_src>
import functools

import jax
import jax.numpy as jnp
from jax.experimental import pallas as pl
from jax.experimental.pallas import tpu as pltpu


def _ceil_to(a, m):
    return -(-a // m) * m


def _cdiv(a, b):
    return -(-a // b)


def _vmem_capacity_bytes():
    """Physical VMEM per core; conservative fallback if the query is unavailable."""
    try:
        cap = getattr(pltpu.get_tpu_info(), "vmem_capacity_bytes", None)
        if cap:
            return int(cap)
    except Exception:
        pass
    return 64 << 20  # v7x per-TensorCore VMEM (most restrictive generation)


# --------------------------------------------------------------------------- #
# Fused single-pass kernel: global-avg-pool + 1x1-conv MLP + sigmoid + scale.  #
# --------------------------------------------------------------------------- #
def _fused_kernel(x_ref, w1t_ref, b1_ref, w2t_ref, b2_ref, o_ref, *, inv_hw):
    x = x_ref[...]                                                   # (bt, C, HW)
    pooled = jnp.sum(x.astype(jnp.float32), axis=2) * inv_hw         # (bt, C)
    # conv1 (1x1) C -> C_mid, ReLU.  Weights pre-transposed in the wrapper.
    h = jnp.dot(pooled, w1t_ref[...], preferred_element_type=jnp.float32)
    h = jnp.maximum(h + b1_ref[...], 0.0)                            # (bt, C_mid)
    # conv2 (1x1) C_mid -> C, Sigmoid.
    s = jnp.dot(h, w2t_ref[...], preferred_element_type=jnp.float32)
    gate = jax.nn.sigmoid(s + b2_ref[...]).astype(x.dtype)           # (bt, C)
    o_ref[...] = x * gate[:, :, None]


# --------------------------------------------------------------------------- #
# Two-pass fallback for images whose full slab does not fit the VMEM budget.   #
# --------------------------------------------------------------------------- #
def _pool_mlp_kernel(x_ref, w1t_ref, b1_ref, w2t_ref, b2_ref, s_ref, acc_ref,
                     *, inv_hw, hw_total, thw, needs_mask):
    """Streaming global-avg-pool over HW tiles + squeeze-excite MLP epilogue."""
    k = pl.program_id(1)

    @pl.when(k == 0)
    def _():
        acc_ref[...] = jnp.zeros_like(acc_ref)

    x = x_ref[...].astype(jnp.float32)                               # (1, C, thw)
    if needs_mask:
        # Ragged last tile: OOB lanes of a partial block are undefined -> mask.
        lane = jax.lax.broadcasted_iota(jnp.int32, x.shape, dimension=2)
        x = jnp.where(lane + k * thw < hw_total, x, 0.0)
    acc_ref[...] += jnp.sum(x, axis=2)                               # (1, C)

    @pl.when(k == pl.num_programs(1) - 1)
    def _():
        pooled = acc_ref[...] * inv_hw                               # (1, C)
        h = jnp.dot(pooled, w1t_ref[...], preferred_element_type=jnp.float32)
        h = jnp.maximum(h + b1_ref[...], 0.0)                        # (1, C_mid)
        s = jnp.dot(h, w2t_ref[...], preferred_element_type=jnp.float32)
        s_ref[0] = jax.nn.sigmoid(s + b2_ref[...]).astype(s_ref.dtype)


def _scale_kernel(x_ref, s_ref, o_ref):
    """out = x * s  (broadcast the per-(image, channel) gate over HW)."""
    gate = s_ref[0].astype(x_ref.dtype)                              # (1, C)
    o_ref[...] = x_ref[...] * gate[:, :, None]


# --------------------------------------------------------------------------- #
# Wrapper.                                                                     #
# --------------------------------------------------------------------------- #
def channel_attention(x, w1, b1, w2, b2, *,
                      max_block_bytes=16 << 20, donate_x=False):
    """x: (B, C, H, W); w1: (C_mid, C); b1: (C_mid,); w2: (C, C_mid); b2: (C,)."""
    B, C, H, W = x.shape
    HW = H * W
    C_mid = w1.shape[0]
    itemsize = jnp.dtype(x.dtype).itemsize

    # ---- per-generation VMEM budget (explicit 4x double-buffered accounting) ----
    c_pad = _ceil_to(C, 8)                       # sublane padding of the C axis
    hw_vmem = _ceil_to(HW, 128)                  # lane padding of the HW axis
    vmem_cap = _vmem_capacity_bytes()            # 128 MiB v5e/v6e, 64 MiB v7x
    vmem_limit = min((vmem_cap * 3) // 4, 96 << 20)      # 96 MiB v5e/v6e, 48 MiB v7x
    # 2 input + 2 output pipeline buffers per block + headroom for f32 temps.
    block_cap = max(c_pad * 128 * itemsize,
                    min(max_block_bytes, vmem_limit // 6))

    # ---- layout plumbing once in plain JAX (views / tiny arrays, no big copies) ----
    x_flat = x.reshape(B, C, HW)
    w1t = jnp.asarray(w1, jnp.float32).T                  # (C, C_mid)
    w2t = jnp.asarray(w2, jnp.float32).T                  # (C_mid, C)
    b1_2d = jnp.asarray(b1, jnp.float32).reshape(1, C_mid)
    b2_2d = jnp.asarray(b2, jnp.float32).reshape(1, C)

    per_image_bytes = c_pad * hw_vmem * itemsize
    inv_hw = 1.0 / HW
    io_alias = {0: 0} if donate_x else {}

    # ======================= fused single-pass path ======================= #
    if per_image_bytes <= block_cap:
        # Keep the (parallel) batch grid >= 2 when B >= 2 so both v7x cores work.
        max_bt = B if B == 1 else max(1, B // 2)
        bt = 1
        for d in range(1, max_bt + 1):
            if B % d == 0 and d * per_image_bytes <= block_cap:
                bt = d
        n_b = B // bt

        out_flat = pl.pallas_call(
            functools.partial(_fused_kernel, inv_hw=inv_hw),
            out_shape=jax.ShapeDtypeStruct((B, C, HW), x.dtype),
            grid=(n_b,),
            in_specs=[
                pl.BlockSpec((bt, C, HW), lambda i: (i, 0, 0)),
                pl.BlockSpec((C, C_mid), lambda i: (0, 0)),
                pl.BlockSpec((1, C_mid), lambda i: (0, 0)),
                pl.BlockSpec((C_mid, C), lambda i: (0, 0)),
                pl.BlockSpec((1, C), lambda i: (0, 0)),
            ],
            out_specs=pl.BlockSpec((bt, C, HW), lambda i: (i, 0, 0)),
            compiler_params=pltpu.CompilerParams(
                dimension_semantics=("parallel",),
                vmem_limit_bytes=vmem_limit,
            ),
            cost_estimate=pl.CostEstimate(
                flops=2 * B * C * HW + 4 * B * C * C_mid,
                transcendentals=B * C,
                bytes_accessed=2 * B * C * HW * itemsize
                + (2 * C * C_mid + C_mid + C) * 4,
            ),
            input_output_aliases=io_alias,
        )(x_flat, w1t, b1_2d, w2t, b2_2d)
        return out_flat.reshape(B, C, H, W)

    # ==================== streamed two-pass fallback ====================== #
    # A single image's slab exceeds the block budget -> bt = 1, stream HW tiles.
    max_lanes = max(1, block_cap // (c_pad * itemsize * 128))
    thw = min(max_lanes * 128, hw_vmem)
    if HW % 128 == 0:
        # Divisor-aware tile: keep every block fully lane-dense (no ragged tail).
        for m in range(thw // 128, 0, -1):
            if HW % (m * 128) == 0:
                thw = m * 128
                break
    n_hw = _cdiv(HW, thw)
    needs_mask = (HW % thw) != 0

    # ---- pass 1: pooled mean + squeeze-excite MLP -> gates s, shape (B, 1, C) ----
    s = pl.pallas_call(
        functools.partial(_pool_mlp_kernel, inv_hw=inv_hw, hw_total=HW,
                          thw=thw, needs_mask=needs_mask),
        out_shape=jax.ShapeDtypeStruct((B, 1, C), jnp.float32),
        grid=(B, n_hw),
        in_specs=[
            pl.BlockSpec((1, C, thw), lambda b, k: (b, 0, k)),
            pl.BlockSpec((C, C_mid), lambda b, k: (0, 0)),
            pl.BlockSpec((1, C_mid), lambda b, k: (0, 0)),
            pl.BlockSpec((C_mid, C), lambda b, k: (0, 0)),
            pl.BlockSpec((1, C), lambda b, k: (0, 0)),
        ],
        out_specs=pl.BlockSpec((1, 1, C), lambda b, k: (b, 0, 0)),
        scratch_shapes=[pltpu.VMEM((1, C), jnp.float32)],
        compiler_params=pltpu.CompilerParams(
            dimension_semantics=("parallel", "arbitrary"),
            vmem_limit_bytes=vmem_limit,
        ),
        cost_estimate=pl.CostEstimate(
            flops=B * C * HW + 4 * B * C * C_mid,
            transcendentals=B * C,
            bytes_accessed=B * C * HW * itemsize + B * C * 4
            + (2 * C * C_mid + C_mid + C) * 4,
        ),
    )(x_flat, w1t, b1_2d, w2t, b2_2d)

    # ---- pass 2: lane-dense elementwise scale out = x * s ----
    out_flat = pl.pallas_call(
        _scale_kernel,
        out_shape=jax.ShapeDtypeStruct((B, C, HW), x.dtype),
        grid=(B, n_hw),
        in_specs=[
            pl.BlockSpec((1, C, thw), lambda b, j: (b, 0, j)),
            pl.BlockSpec((1, 1, C), lambda b, j: (b, 0, 0)),
        ],
        out_specs=pl.BlockSpec((1, C, thw), lambda b, j: (b, 0, j)),
        compiler_params=pltpu.CompilerParams(
            dimension_semantics=("parallel", "parallel"),
            vmem_limit_bytes=vmem_limit,
        ),
        cost_estimate=pl.CostEstimate(
            flops=B * C * HW,
            transcendentals=0,
            bytes_accessed=2 * B * C * HW * itemsize + B * C * 4,
        ),
        input_output_aliases=io_alias,
    )(x_flat, s)
    return out_flat.reshape(B, C, H, W)


def _reference(x, w1, b1, w2, b2):
    y = jnp.mean(x, axis=(2, 3))                        # (B, C)
    h = jnp.maximum(y @ w1.T + b1, 0.0)                 # (B, C_mid)
    s = jax.nn.sigmoid(h @ w2.T + b2)                   # (B, C)
    return x * s[:, :, None, None]


if __name__ == "__main__":
    # Module config: num_feat=10, squeeze_factor=5 -> mid channels = 2.
    B, C, H, W = 2, 10, 16, 16
    C_mid = max(1, C // 5)

    key = jax.random.PRNGKey(0)
    kx, k1, k2, k3, k4 = jax.random.split(key, 5)

    x = jax.random.normal(kx, (B, C, H, W), dtype=jnp.float32)
    w1 = jax.random.normal(k1, (C_mid, C), dtype=jnp.float32) * (1.0 / jnp.sqrt(C))
    b1 = jax.random.normal(k2, (C_mid,), dtype=jnp.float32) * 0.1
    w2 = jax.random.normal(k3, (C, C_mid), dtype=jnp.float32) * (1.0 / jnp.sqrt(C_mid))
    b2 = jax.random.normal(k4, (C,), dtype=jnp.float32) * 0.1

    # Primary fused single-pass path.
    out = jax.block_until_ready(channel_attention(x, w1, b1, w2, b2))
    ref = _reference(x, w1, b1, w2, b2)
    assert out.shape == (B, C, H, W)
    assert jnp.allclose(out, ref, atol=1e-5, rtol=1e-5), float(
        jnp.max(jnp.abs(out - ref)))

    # Exercise the streamed two-pass fallback (huge-image path) by forcing a tiny
    # block budget, with a ragged H*W (400 = 3*128 + 16) and B == 1.
    B2, H2, W2 = 1, 20, 20
    x2 = jax.random.normal(kx, (B2, C, H2, W2), dtype=jnp.float32)
    out2 = jax.block_until_ready(
        channel_attention(x2, w1, b1, w2, b2, max_block_bytes=16 * 1024))
    ref2 = _reference(x2, w1, b1, w2, b2)
    assert out2.shape == (B2, C, H2, W2)
    assert jnp.allclose(out2, ref2, atol=1e-5, rtol=1e-5), float(
        jnp.max(jnp.abs(out2 - ref2)))

    print("KERNEL_OK")
</pallas_src>

<mosaic_0001>
module attributes {stable_mosaic.version = 11 : i64} {
  func.func @_fused_kernel(%arg0: i32, %arg1: memref<1x10x256xf32, #tpu.memory_space<vmem>>, %arg2: memref<10x2xf32, #tpu.memory_space<vmem>>, %arg3: memref<1x2xf32, #tpu.memory_space<vmem>>, %arg4: memref<2x10xf32, #tpu.memory_space<vmem>>, %arg5: memref<1x10xf32, #tpu.memory_space<vmem>>, %arg6: memref<1x10x256xf32, #tpu.memory_space<vmem>>) attributes {dimension_semantics = [#tpu.dimension_semantics<parallel>], iteration_bounds = array<i64: 2>, scalar_prefetch = 0 : i64, scratch_operands = 0 : i64, tpu.core_type = #tpu.core_type<tc>, window_params = [{transform_indices = @transform_0, window_bounds = array<i64: 1, 10, 256>}, {pipeline_mode = #tpu.pipeline_mode<synchronous>, transform_indices = @transform_1, window_bounds = array<i64: 10, 2>}, {pipeline_mode = #tpu.pipeline_mode<synchronous>, transform_indices = @transform_2, window_bounds = array<i64: 1, 2>}, {pipeline_mode = #tpu.pipeline_mode<synchronous>, transform_indices = @transform_3, window_bounds = array<i64: 2, 10>}, {pipeline_mode = #tpu.pipeline_mode<synchronous>, transform_indices = @transform_4, window_bounds = array<i64: 1, 10>}, {transform_indices = @transform_5, window_bounds = array<i64: 1, 10, 256>}]} {
    %c0 = arith.constant 0 : index
    %c0_0 = arith.constant 0 : index
    %c0_1 = arith.constant 0 : index
    %0 = vector.load %arg1[%c0, %c0_0, %c0_1] : memref<1x10x256xf32, #tpu.memory_space<vmem>>, vector<1x10x256xf32>
    %cst = arith.constant dense<0.000000e+00> : vector<1x10xf32>
    %1 = vector.multi_reduction <add>, %0, %cst [2] : vector<1x10x256xf32> to vector<1x10xf32>
    %cst_2 = arith.constant 3.906250e-03 : f32
    %2 = vector.broadcast %cst_2 : f32 to vector<1x10xf32>
    %3 = arith.mulf %1, %2 : vector<1x10xf32>
    %c0_3 = arith.constant 0 : index
    %c0_4 = arith.constant 0 : index
    %4 = vector.load %arg2[%c0_3, %c0_4] : memref<10x2xf32, #tpu.memory_space<vmem>>, vector<10x2xf32>
    %cst_5 = arith.constant dense<0.000000e+00> : vector<1x2xf32>
    %5 = tpu.matmul %3, %4, %cst_5 {dimension_numbers = #tpu.dot_dimension_numbers<[1], [0], [0], [1], [0, 0, 1, 1], [], []>} : vector<1x10xf32>, vector<10x2xf32>, vector<1x2xf32> -> vector<1x2xf32>
    %c0_6 = arith.constant 0 : index
    %c0_7 = arith.constant 0 : index
    %6 = vector.load %arg3[%c0_6, %c0_7] : memref<1x2xf32, #tpu.memory_space<vmem>>, vector<1x2xf32>
    %7 = arith.addf %5, %6 : vector<1x2xf32>
    %cst_8 = arith.constant 0.000000e+00 : f32
    %8 = vector.broadcast %cst_8 : f32 to vector<1x2xf32>
    %9 = arith.maximumf %7, %8 : vector<1x2xf32>
    %c0_9 = arith.constant 0 : index
    %c0_10 = arith.constant 0 : index
    %10 = vector.load %arg4[%c0_9, %c0_10] : memref<2x10xf32, #tpu.memory_space<vmem>>, vector<2x10xf32>
    %cst_11 = arith.constant dense<0.000000e+00> : vector<1x10xf32>
    %11 = tpu.matmul %9, %10, %cst_11 {dimension_numbers = #tpu.dot_dimension_numbers<[1], [0], [0], [1], [0, 0, 1, 1], [], []>} : vector<1x2xf32>, vector<2x10xf32>, vector<1x10xf32> -> vector<1x10xf32>
    %c0_12 = arith.constant 0 : index
    %c0_13 = arith.constant 0 : index
    %12 = vector.load %arg5[%c0_12, %c0_13] : memref<1x10xf32, #tpu.memory_space<vmem>>, vector<1x10xf32>
    %13 = arith.addf %11, %12 : vector<1x10xf32>
    %14 = arith.negf %13 : vector<1x10xf32>
    %15 = math.exp %14 : vector<1x10xf32>
    %cst_14 = arith.constant 1.000000e+00 : f32
    %16 = vector.broadcast %cst_14 : f32 to vector<1x10xf32>
    %17 = arith.addf %16, %15 : vector<1x10xf32>
    %18 = arith.divf %16, %17 : vector<1x10xf32>
    %19 = vector.shape_cast %18 : vector<1x10xf32> to vector<1x10x1xf32>
    %20 = vector.broadcast %19 : vector<1x10x1xf32> to vector<1x10x256xf32>
    %21 = arith.mulf %0, %20 : vector<1x10x256xf32>
    %c0_15 = arith.constant 0 : index
    %c0_16 = arith.constant 0 : index
    %c0_17 = arith.constant 0 : index
    %22 = vector.load %arg6[%c0_15, %c0_16, %c0_17] : memref<1x10x256xf32, #tpu.memory_space<vmem>>, vector<1x10x256xf32>
    tpu.vector_store %arg6[%c0_15, %c0_16, %c0_17], %21 {strides = array<i32>} : memref<1x10x256xf32, #tpu.memory_space<vmem>>, vector<1x10x256xf32>,
    return
  }
  func.func @transform_0(%arg0: i32) -> (i32, i32, i32) {
    %c0_i32 = arith.constant 0 : i32
    %c0_i32_0 = arith.constant 0 : i32
    %c0_i32_1 = arith.constant 0 : i32
    return %arg0, %c0_i32, %c0_i32_0 : i32, i32, i32
  }
  func.func @transform_1(%arg0: i32) -> (i32, i32) {
    %c0_i32 = arith.constant 0 : i32
    %c0_i32_0 = arith.constant 0 : i32
    %c0_i32_1 = arith.constant 0 : i32
    return %c0_i32, %c0_i32_0 : i32, i32
  }
  func.func @transform_2(%arg0: i32) -> (i32, i32) {
    %c0_i32 = arith.constant 0 : i32
    %c0_i32_0 = arith.constant 0 : i32
    %c0_i32_1 = arith.constant 0 : i32
    return %c0_i32, %c0_i32_0 : i32, i32
  }
  func.func @transform_3(%arg0: i32) -> (i32, i32) {
    %c0_i32 = arith.constant 0 : i32
    %c0_i32_0 = arith.constant 0 : i32
    %c0_i32_1 = arith.constant 0 : i32
    return %c0_i32, %c0_i32_0 : i32, i32
  }
  func.func @transform_4(%arg0: i32) -> (i32, i32) {
    %c0_i32 = arith.constant 0 : i32
    %c0_i32_0 = arith.constant 0 : i32
    %c0_i32_1 = arith.constant 0 : i32
    return %c0_i32, %c0_i32_0 : i32, i32
  }
  func.func @transform_5(%arg0: i32) -> (i32, i32, i32) {
    %c0_i32 = arith.constant 0 : i32
    %c0_i32_0 = arith.constant 0 : i32
    %c0_i32_1 = arith.constant 0 : i32
    return %arg0, %c0_i32, %c0_i32_0 : i32, i32, i32
  }
}

</mosaic_0001>

<bundles_post_ra>
// kernel: tpu_custom_call.1
= control target key start
LH: loop header
LB: loop body
LE: loop exit
PB: predicated region body
PF: predicated region fallthrough
CT: control target
= control target key end

     0   :  { %s583_s18 = smov 0   ;;  %s634_s0 = inlined_call_operand.vmem [shape: f32[2,10,256], index: 0, kind: input, shape index: {}]   ;;  %s635_s1 = inlined_call_operand.vmem [shape: f32[10,2], index: 1, kind: input, shape index: {}]   ;;  %s636_s2 = inlined_call_operand.vmem [shape: f32[1,2], index: 2, kind: input, shape index: {}]   ;;  %s637_s3 = inlined_call_operand.vmem [shape: f32[2,10], index: 3, kind: input, shape index: {}]   ;;  %s638_s4 = inlined_call_operand.vmem [shape: f32[1,10], index: 4, kind: input, shape index: {}]   ;;  %s639_s5 = inlined_call_operand.vmem [shape: f32[2,10,256], index: 5, kind: output, shape index: {}]  }
   0x1 LB: > { %s494_s19 = sadd.s32 4294967295, %s549_s18   ;;  %p498_p0 = scmp.ge.s32.totalorder %s549_s18, 1  ;;  %s549_s18 = sphi %s583_s18, %s15_s18  }
   0x2   : > { %p187_p1 = scmp.lt.s32.totalorder %s549_s18, 3 }
   0x4   : > { %p188_p2 = pnand %p498_p0, %p187_p1 }
   0x5   : > { %p215_p3 = scmp.lt.s32.totalorder (!%p188_p2), %s494_s19, 1 }
   0x6   : > { %191 = sbr.rel (%p188_p2) target bundleno = 712 (0x2c8), region = 40 }
   0xb   : > { %s641_s19 = smov (!%p215_p3, %s494_s19), 1  ;;  %vm232_vm0 = vcmask 1041408   ;;  %v551_v8 = vmov 0.0   ;;  %v241_v9 = vld [vmem:[%s635_s1 + $0x8] sm:$0x3]  ;;  %v240_v10 = vld [vmem:[%s635_s1] sm:$0xff]  ;;  %v245_v11 = vlaneseq }
   0xc   : > { %s510_s20 = sshll.u32 %s641_s19, 5  ;;  %517 = vmatprep.subr.mxu0 %v551_v8  ;;  %524 = vmatprep.subr.mxu1 %v551_v8  ;;  %vm552_vm1 = vmmov 0   ;;  %vm256_vm2 = vcmask 130112   ;;  %vm258_vm3 = vcmask 80896   ;;  %v335_v24 = vld [vmem:[%s637_s3] sm:$0x3] }
   0xd   : > { %s219_s23 = scalar_lea.vmem %s634_s0, %s510_s20  ;;  %518 = vmatpush3.msk.msra.mxu0 %vm232_vm0, %v241_v9  ;;  %521 = vmatprep.mubr.msk.f32.mxu0 %vm552_vm1, %v551_v8  ;;  %v246_v12 = vand.u32 127, %v245_v11  ;;  %v248_v13 = vshrl.u32 %v245_v11, 7  ;;  %v242_v25 = vld [vmem:[%s636_s2] sm:$0x1]  ;;  %vm337_vm4 = vcmask 15360   ;;  %s224_s11 = scalar_lea.vmem %s639_s5, %s510_s20 }
   0xe   : > { %v225_v0 = vld [vmem:[%s219_s23] sm:$0xff]  ;;  %v226_v1 = vld [vmem:[%s219_s23 + $0x8] sm:$0xff]  ;;  %v599_v2 = vld [vmem:[%s219_s23 + $0x10] sm:$0x3]  ;;  %519 = vmatprep.subr.mxu0 %v551_v8  ;;  %526 = vmatprep.mubr.msk.f32.mxu1 %vm552_vm1, %v551_v8 }
   0xf   : > { %v229_v3 = vadd.f32 %v226_v1, %v225_v0  ;;  %v601_v4 = vld [vmem:[%s219_s23 + $0x18] sm:$0x3]  ;;  %v233_v5 = vsel %vm232_vm0, %v599_v2, 0.0  ;;  %520 = vmatpush3.msra.mxu0 %v240_v10  ;;  %v251_v14 = vadd.s32 4294967288, %v246_v12  ;;  %v249_v16 = vsub.s32 %v246_v12, %v248_v13  ;;  %525 = vmatpush3.msk.msra.mxu1 %vm232_vm0, %v335_v24  ;;  %v336_v30 = vld [vmem:[%s638_s4] sm:$0x1] }
  0x10   : > { %v234_v6 = vsel %vm232_vm0, %v601_v4, 0.0  ;;  %v422_v37 = vsub.s32 0, %v248_v13 }
  0x11   : > { %230 = vadd.xlane.f32.xlu0 %v229_v3  ;;  %v235_v7 = vadd.f32 %v234_v6, %v233_v5  ;;  %v254_v18 = vsub.s32 %v251_v14, %v248_v13 }
  0x15   : > { %236 = vadd.xlane.f32.xlu0 %v235_v7 }
  0x9a   : > { %v231_v15 = vpop.xlane.xlu0 %230 }
  0x9b   : > { %v238_v17 = vmul.f32 0.00390625, %v231_v15 }
  0x9d   : > { %v250_v21 = vrot.slane %v238_v17, %v249_v16 }
  0x9e   : > { %v237_v19 = vpop.xlane.xlu0 %236 }
  0x9f   : > { %v239_v20 = vmul.f32 0.00390625, %v237_v19 }
  0xa1   : > { %v255_v22 = vrot.slane %v239_v20, %v254_v18 }
  0xa3   : > { %v257_v23 = vsel %vm256_vm2, %v255_v22, %v250_v21 }
  0xa4   : > { %522 = vmatmul.mubr.msk.f32.vlgmr.msra.gmra.mxu0 %vm258_vm3, %v257_v23 }
 0x164   : > { %v330_v26 = vpop.f32.mrf.mxu0 }
 0x165   : > { %v331_v27 = vadd.f32 %v330_v26, %v242_v25 }
 0x166   : > { %v523_v28 = vpop.f32.mrf.mxu0 }
 0x167   : > { %v334_v29 = vmax.f32 %v331_v27, 0.0 }
 0x169   : > { %527 = vmatmul.mubr.msk.f32.vlgmr.msra.gmra.mxu1 %vm337_vm4, %v334_v29 }
 0x229   : > { %v410_v31 = vpop.f32.mrf.mxu1 }
 0x22a   : > { %v411_v32 = vadd.f32 %v410_v31, %v336_v30 }
 0x22b   : > { %v528_v33 = vpop.f32.mrf.mxu1 }
 0x22c   : > { %v507_v34 = vmul.f32 -1.442695, %v411_v32 }
 0x22e   : > { %539 = vpow2.f32 %v507_v34 }
 0x23b   : > { %v540_v35 = vpop.eup %539 }
 0x23c   : > { %v417_v36 = vadd.f32 1.0, %v540_v35 }
 0x23e   : > { %541 = vrcp.f32 %v417_v36 }
 0x24b   : > { %v542_v38 = vpop.eup %541 }
 0x24c   : > { %v423_v39 = vrot.slane %v542_v38, %v422_v37 }
 0x24e   : > { %425 = vbcast.lane.b32.xlu1 %v423_v39, 256 }
 0x252   : > { %429 = vbcast.lane.b32.xlu1 %v423_v39, 264 }
 0x2c0   : > { %v426_v40 = vpop.permute.xlu1 %425 }
 0x2c1   : > { %v431_v41 = vmul.f32 %v426_v40, %v225_v0  ;;  %v432_v42 = vmul.f32 %v426_v40, %v226_v1 }
 0x2c3   : > { %435 = vst [vmem:[%s224_s11] sm:$0xff] %v431_v41  ;;  %436 = vst [vmem:[%s224_s11 + $0x8] sm:$0xff] %v432_v42 }
 0x2c4   : > { %v430_v43 = vpop.permute.xlu1 %429 }
 0x2c5   : > { %v433_v44 = vmul.f32 %v430_v43, %v599_v2  ;;  %v434_v45 = vmul.f32 %v430_v43, %v601_v4 }
 0x2c7   : > { %437 = vst [vmem:[%s224_s11 + $0x10] sm:$0x3] %v433_v44  ;;  %438 = vst [vmem:[%s224_s11 + $0x18] sm:$0x3] %v434_v45 }
 0x2c8 PF: > { %s15_s18 = sadd.s32 1, %s549_s18  }
 0x2c9   : > { %p12_p4 = scmp.ge.s32.totalorder %s15_s18, 4  }
 0x2cb   :  { %14 = sbr.rel (!%p12_p4) target bundleno = 1 (0x1), region = 70 }

</bundles_post_ra>
